<compile_context>
chip_gen: v7x
topology: tpu7x:2x2x1
jax: 0.10.0
libtpu: 0.0.40
codegen_flags: <defaults>
</compile_context>

<pallas_src>
import jax
import jax.numpy as jnp
from jax.experimental import pallas as pl
from jax.experimental.pallas import tpu as pltpu


def _round_up(x, m):
    return ((x + m - 1) // m) * m


def _timegap_kernel(idx_ref, w_ref, tg_ref, emb_ref):
    tn, input_size = tg_ref.shape

    idx = idx_ref[...]            # (TN, 3) int32, pre-shifted into concat lanes
    rg = idx[:, 0:1]              # (TN, 1)
    sg = idx[:, 1:2]
    pc = idx[:, 2:3]

    # Single 48-lane iota; one-hot for all three segments in one compare slab.
    iota = jax.lax.broadcasted_iota(jnp.int32, (tn, input_size), 1)
    tg = ((iota == rg) | (iota == sg) | (iota == pc)).astype(jnp.float32)

    tg_ref[...] = tg
    # tg_emb = tg @ W_t  (MXU; K=48, N=emb_size — tiny, single dot per tile)
    emb_ref[...] = jnp.dot(tg, w_ref[...], preferred_element_type=jnp.float32)


def timegap_forward(rgap, sgap, pcount, w_t, num_rgap, num_sgap, num_pcount,
                    *, row_tile=2048):
    """rgap/sgap/pcount: (B, S) integer indices.  w_t: (input_size, emb_size) f32
    (transposed nn.Linear weight, so tg @ w_t == torch's time_emb(tg))."""
    B, S = rgap.shape
    N = B * S
    input_size = num_rgap + num_sgap + num_pcount
    emb_size = w_t.shape[1]
    assert w_t.shape == (input_size, emb_size)

    # Pack the three index streams into one (N, 3) int32 array, shifted into the
    # concatenated one-hot lane space: [rgap | sgap | pcount].
    idx = jnp.stack(
        [rgap.reshape(N).astype(jnp.int32),
         sgap.reshape(N).astype(jnp.int32) + num_rgap,
         pcount.reshape(N).astype(jnp.int32) + num_rgap + num_sgap],
        axis=-1)

    # Row tile: multiple of 8 (f32 sublane), capped by the requested tile size.
    tn = min(row_tile, _round_up(N, 8))
    n_pad = _round_up(N, tn)
    if n_pad != N:
        # Pad rows get index -1 -> no lane matches -> all-zero one-hot rows.
        idx = jnp.pad(idx, ((0, n_pad - N), (0, 0)), constant_values=-1)

    grid = (n_pad // tn,)

    tg_full, emb_full = pl.pallas_call(
        _timegap_kernel,
        out_shape=(
            jax.ShapeDtypeStruct((n_pad, input_size), jnp.float32),
            jax.ShapeDtypeStruct((n_pad, emb_size), jnp.float32),
        ),
        grid=grid,
        in_specs=[
            pl.BlockSpec((tn, 3), lambda i: (i, 0)),                    # packed indices
            pl.BlockSpec((input_size, emb_size), lambda i: (0, 0)),     # W_t resident
        ],
        out_specs=(
            pl.BlockSpec((tn, input_size), lambda i: (i, 0)),           # concat one-hot slab
            pl.BlockSpec((tn, emb_size), lambda i: (i, 0)),             # embedding
        ),
        compiler_params=pltpu.CompilerParams(
            dimension_semantics=("parallel",)),
    )(idx, w_t)

    tg = tg_full[:N]
    rgap_oh = tg[:, :num_rgap].reshape(B, S, num_rgap)
    sgap_oh = tg[:, num_rgap:num_rgap + num_sgap].reshape(B, S, num_sgap)
    pcount_oh = tg[:, num_rgap + num_sgap:].reshape(B, S, num_pcount)
    tg_emb = emb_full[:N].reshape(B, S, emb_size)
    return rgap_oh, sgap_oh, pcount_oh, tg_emb


def _xavier_uniform(key, fan_out, fan_in, dtype=jnp.float32):
    limit = (6.0 / (fan_in + fan_out)) ** 0.5
    return jax.random.uniform(key, (fan_out, fan_in), dtype, -limit, limit)


def _check(rgap, sgap, pcount, w_t, num_rgap, num_sgap, num_pcount, row_tile):
    rgap_oh, sgap_oh, pcount_oh, tg_emb = timegap_forward(
        rgap, sgap, pcount, w_t, num_rgap, num_sgap, num_pcount,
        row_tile=row_tile)
    jax.block_until_ready(tg_emb)

    rg_ref = jax.nn.one_hot(rgap, num_rgap, dtype=jnp.float32)
    sg_ref = jax.nn.one_hot(sgap, num_sgap, dtype=jnp.float32)
    pc_ref = jax.nn.one_hot(pcount, num_pcount, dtype=jnp.float32)
    tg_ref = jnp.concatenate([rg_ref, sg_ref, pc_ref], axis=-1) @ w_t
    assert jnp.allclose(rgap_oh, rg_ref)
    assert jnp.allclose(sgap_oh, sg_ref)
    assert jnp.allclose(pcount_oh, pc_ref)
    assert jnp.allclose(tg_emb, tg_ref, atol=1e-5)


if __name__ == "__main__":
    num_rgap, num_sgap, num_pcount = 16, 16, 16
    emb_size = 32
    input_size = num_rgap + num_sgap + num_pcount

    key = jax.random.PRNGKey(0)
    k_w, k_r, k_s, k_p = jax.random.split(key, 4)

    # nn.Linear(input_size, emb_size, bias=False) weight is (emb_size, input_size);
    # store it transposed so tg @ w_t matches torch exactly.
    weight = _xavier_uniform(k_w, emb_size, input_size)
    w_t = weight.T  # (input_size, emb_size)

    # Small shape (single-tile path).
    B, S = 2, 8
    rgap = jax.random.randint(k_r, (B, S), 0, num_rgap, dtype=jnp.int32)
    sgap = jax.random.randint(k_s, (B, S), 0, num_sgap, dtype=jnp.int32)
    pcount = jax.random.randint(k_p, (B, S), 0, num_pcount, dtype=jnp.int32)
    _check(rgap, sgap, pcount, w_t, num_rgap, num_sgap, num_pcount, row_tile=2048)

    # Modest shape that exercises the multi-tile grid + row padding path.
    B2, S2 = 4, 600   # N = 2400 -> pad to 2560, grid of 5 tiles at row_tile=512
    rgap2 = jax.random.randint(k_r, (B2, S2), 0, num_rgap, dtype=jnp.int32)
    sgap2 = jax.random.randint(k_s, (B2, S2), 0, num_sgap, dtype=jnp.int32)
    pcount2 = jax.random.randint(k_p, (B2, S2), 0, num_pcount, dtype=jnp.int32)
    _check(rgap2, sgap2, pcount2, w_t, num_rgap, num_sgap, num_pcount, row_tile=512)

    print("KERNEL_OK")
</pallas_src>

<mosaic_0001>
module attributes {stable_mosaic.version = 11 : i64} {
  func.func @_timegap_kernel(%arg0: i32, %arg1: memref<16x3xi32, #tpu.memory_space<vmem>>, %arg2: memref<48x32xf32, #tpu.memory_space<vmem>>, %arg3: memref<16x48xf32, #tpu.memory_space<vmem>>, %arg4: memref<16x32xf32, #tpu.memory_space<vmem>>) attributes {dimension_semantics = [#tpu.dimension_semantics<parallel>], iteration_bounds = array<i64: 1>, scalar_prefetch = 0 : i64, scratch_operands = 0 : i64, tpu.core_type = #tpu.core_type<tc>, window_params = [{transform_indices = @transform_0, window_bounds = array<i64: 16, 3>}, {pipeline_mode = #tpu.pipeline_mode<synchronous>, transform_indices = @transform_1, window_bounds = array<i64: 48, 32>}, {transform_indices = @transform_2, window_bounds = array<i64: 16, 48>}, {transform_indices = @transform_3, window_bounds = array<i64: 16, 32>}]} {
    %c0 = arith.constant 0 : index
    %c0_0 = arith.constant 0 : index
    %0 = vector.load %arg1[%c0, %c0_0] : memref<16x3xi32, #tpu.memory_space<vmem>>, vector<16x3xi32>
    %1 = vector.extract_strided_slice %0 {offsets = [0, 0], sizes = [16, 1], strides = [1, 1]} : vector<16x3xi32> to vector<16x1xi32>
    %2 = vector.extract_strided_slice %0 {offsets = [0, 1], sizes = [16, 1], strides = [1, 1]} : vector<16x3xi32> to vector<16x1xi32>
    %3 = vector.extract_strided_slice %0 {offsets = [0, 2], sizes = [16, 1], strides = [1, 1]} : vector<16x3xi32> to vector<16x1xi32>
    %4 = tpu.iota {dimensions = array<i32: 1>} : vector<16x48xi32>
    %5 = vector.broadcast %1 : vector<16x1xi32> to vector<16x48xi32>
    %6 = arith.cmpi eq, %4, %5 : vector<16x48xi32>
    %7 = vector.broadcast %2 : vector<16x1xi32> to vector<16x48xi32>
    %8 = arith.cmpi eq, %4, %7 : vector<16x48xi32>
    %9 = arith.ori %6, %8 : vector<16x48xi1>
    %10 = vector.broadcast %3 : vector<16x1xi32> to vector<16x48xi32>
    %11 = arith.cmpi eq, %4, %10 : vector<16x48xi32>
    %12 = arith.ori %9, %11 : vector<16x48xi1>
    %13 = arith.extui %12 : vector<16x48xi1> to vector<16x48xi32>
    %14 = arith.sitofp %13 : vector<16x48xi32> to vector<16x48xf32>
    %c0_1 = arith.constant 0 : index
    %c0_2 = arith.constant 0 : index
    %15 = vector.load %arg3[%c0_1, %c0_2] : memref<16x48xf32, #tpu.memory_space<vmem>>, vector<16x48xf32>
    tpu.vector_store %arg3[%c0_1, %c0_2], %14 {strides = array<i32>} : memref<16x48xf32, #tpu.memory_space<vmem>>, vector<16x48xf32>,
    %c0_3 = arith.constant 0 : index
    %c0_4 = arith.constant 0 : index
    %16 = vector.load %arg2[%c0_3, %c0_4] : memref<48x32xf32, #tpu.memory_space<vmem>>, vector<48x32xf32>
    %cst = arith.constant dense<0.000000e+00> : vector<16x32xf32>
    %17 = tpu.matmul %14, %16, %cst {dimension_numbers = #tpu.dot_dimension_numbers<[1], [0], [0], [1], [0, 0, 1, 1], [], []>} : vector<16x48xf32>, vector<48x32xf32>, vector<16x32xf32> -> vector<16x32xf32>
    %c0_5 = arith.constant 0 : index
    %c0_6 = arith.constant 0 : index
    %18 = vector.load %arg4[%c0_5, %c0_6] : memref<16x32xf32, #tpu.memory_space<vmem>>, vector<16x32xf32>
    tpu.vector_store %arg4[%c0_5, %c0_6], %17 {strides = array<i32>} : memref<16x32xf32, #tpu.memory_space<vmem>>, vector<16x32xf32>,
    return
  }
  func.func @transform_0(%arg0: i32) -> (i32, i32) {
    %c0_i32 = arith.constant 0 : i32
    %c0_i32_0 = arith.constant 0 : i32
    return %arg0, %c0_i32 : i32, i32
  }
  func.func @transform_1(%arg0: i32) -> (i32, i32) {
    %c0_i32 = arith.constant 0 : i32
    %c0_i32_0 = arith.constant 0 : i32
    %c0_i32_1 = arith.constant 0 : i32
    return %c0_i32, %c0_i32_0 : i32, i32
  }
  func.func @transform_2(%arg0: i32) -> (i32, i32) {
    %c0_i32 = arith.constant 0 : i32
    %c0_i32_0 = arith.constant 0 : i32
    return %arg0, %c0_i32 : i32, i32
  }
  func.func @transform_3(%arg0: i32) -> (i32, i32) {
    %c0_i32 = arith.constant 0 : i32
    %c0_i32_0 = arith.constant 0 : i32
    return %arg0, %c0_i32 : i32, i32
  }
}

</mosaic_0001>

<bundles_post_ra>
// kernel: tpu_custom_call.1
= control target key start
LH: loop header
LB: loop body
LE: loop exit
PB: predicated region body
PF: predicated region fallthrough
CT: control target
= control target key end

     0   :  { %9 = vsyncpa [#allocation3], 0  ;;  %v277_v2 = vmov 0   ;;  %s353_s0 = inlined_call_operand.vmem [shape: s32[16,3], index: 0, kind: input, shape index: {}]   ;;  %s354_s1 = inlined_call_operand.vmem [shape: f32[48,32], index: 1, kind: input, shape index: {}]   ;;  %s355_s2 = inlined_call_operand.hbm [shape: f32[16,48], index: 2, kind: output, shape index: {0}]   ;;  %s356_s3 = inlined_call_operand.hbm [shape: f32[16,32], index: 3, kind: output, shape index: {1}]  }
   0x1   :  { %v16_v0 = vld [vmem:[%s353_s0 + $0x8] sm:$0xff]  ;;  %v15_v1 = vld [vmem:[%s353_s0] sm:$0xff]  ;;  %225 = vset.pattern.permute.xlu1 %v277_v2  ;;  %223 = vset.pattern.permute.xlu0 %v277_v2 }
   0x2   :  { %v54_v3 = vld [vmem:[%s354_s1] sm:$0xff]  ;;  %v55_v4 = vld [vmem:[%s354_s1 + $0x8] sm:$0xff] }
   0x3   :  { %10 = vsyncpa [#allocation5], 0  ;;  %23 = vperm.xlu1 %225, %v16_v0   ;;  %20 = vperm.xlu0 %223, %v15_v1   ;;  %v203_v5 = vpack.c.bf16 %v55_v4, %v54_v3  ;;  %v278_v6 = vmov 1   ;;  %v56_v7 = vld [vmem:[%s354_s1 + $0x10] sm:$0xff]  ;;  %v57_v8 = vld [vmem:[%s354_s1 + $0x18] sm:$0xff]  ;;  %v279_v12 = vmov 2   ;;  %v17_v16 = vlaneseq }
   0x4   :  { %v207_v9 = vpack.c.bf16 %v57_v8, %v56_v7  ;;  %v58_v10 = vld [vmem:[%s354_s1 + $0x20] sm:$0xff]  ;;  %v59_v11 = vld [vmem:[%s354_s1 + $0x28] sm:$0xff]  ;;  %vm51_vm8 = vcmask 392192   ;;  %v280_v22 = vmov 0.0   ;;  %s281_s1 = smov [#allocation2]  }
   0x5   :  { %204 = vmatprep.subr.bf16.mxu0 %v203_v5  ;;  %v211_v13 = vpack.c.bf16 %v59_v11, %v58_v10  ;;  %v18_v17 = vand.u32 127, %v17_v16  ;;  %s149_s27 = sshll.u32 %s281_s1, 4  ;;  %s150_s27 = int_to_ptr.vmem [resolvable:$true] %s149_s27 }
   0x6   :  { %206 = vmatpush3.bf16.msra.mxu0 %v203_v5  ;;  %s229_s28 = scalar_lea.vmem %s150_s27, 256  ;;  %p234_p1 = scmp.lt.s32.totalorder %s150_s27, %s150_s27 }
   0x7   :  { %226 = vset.pattern.permute.xlu1 %v278_v6  ;;  %224 = vset.pattern.permute.xlu0 %v278_v6  ;;  %p230_p0 = scmp.ne.s32.totalorder %s150_s27, %s229_s28  ;;  %p235_p2 = scmp.lt.s32.totalorder %s229_s28, %s229_s28 }
   0x8   :  { %31 = vperm.xlu1 %226, %v16_v0   ;;  %28 = vperm.xlu0 %224, %v15_v1  }
   0x9   :  { %208 = vmatprep.subr.bf16.mxu0 %v207_v9  ;;  %p236_p3 = por %p235_p2, %p234_p1 }
   0xa   :  { %210 = vmatpush3.bf16.msra.mxu0 %v207_v9 }
   0xb   :  { %212 = vmatprep.subr.bf16.mxu0 %v211_v13  ;;  %p237_p4 = pnand %p236_p3, %p230_p0 }
   0xc   :  { %227 = vset.pattern.permute.xlu1 %v279_v12  ;;  %228 = vset.pattern.permute.xlu0 %v279_v12 }
   0xd   :  { %38 = vperm.xlu1 %227, %v15_v1   ;;  %41 = vperm.xlu0 %228, %v16_v0  }
   0xe   :  { %214 = vmatpush3.bf16.msra.mxu0 %v211_v13 }
  0x82   :  { %v24_v14 = vpop.permute.xlu1 %23  ;;  %v21_v15 = vpop.permute.xlu0 %20 }
  0x83   :  { %vm26_vm2 = vcmp.eq.s32.totalorder %v18_v17, %v24_v14  ;;  %vm25_vm3 = vcmp.eq.s32.totalorder %v18_v17, %v21_v15 }
  0x87   :  { %v32_v18 = vpop.permute.xlu1 %31  ;;  %v29_v19 = vpop.permute.xlu0 %28 }
  0x88   :  { %vm34_vm0 = vcmp.eq.s32.totalorder %v18_v17, %v32_v18  ;;  %vm33_vm1 = vcmp.eq.s32.totalorder %v18_v17, %v29_v19 }
  0x89   :  { %vm36_vm4 = vmor %vm26_vm2, %vm34_vm0 }
  0x8a   :  { %vm35_vm5 = vmor %vm25_vm3, %vm33_vm1 }
  0x8c   :  { %v39_v20 = vpop.permute.xlu1 %38  ;;  %v42_v21 = vpop.permute.xlu0 %41 }
  0x8d   :  { %vm43_vm6 = vcmp.eq.s32.totalorder %v18_v17, %v39_v20  ;;  %vm44_vm7 = vcmp.eq.s32.totalorder %v18_v17, %v42_v21 }
  0x8e   :  { %vm46_vm9 = vmor %vm36_vm4, %vm44_vm7 }
  0x8f   :  { %vm45_vm10 = vmor %vm35_vm5, %vm43_vm6  ;;  %v177_v23 = vsel %vm46_vm9, 1.0, %v280_v22 }
  0x90   :  { %v176_v24 = vsel %vm45_vm10, 1.0, %v280_v22  ;;  %53 = vst.msk [vmem:[#allocation2 + $0x8] sm:$0xff] %vm51_vm8, %v177_v23 }
  0x91   :  { %52 = vst.msk [vmem:[#allocation2] sm:$0xff] %vm51_vm8, %v176_v24  ;;  %200 = vmatprep.mubr.msk.f32.mxu0 %vm51_vm8, %v176_v24 }
  0x92   :  { %201 = vmatmul.mubr.msk.f32.vlgmr.msra.gmra.mrb[0].mxu0 %vm51_vm8, %v177_v23 }
  0x93   :  { %240 = shalt.err (!%p237_p4)
}
  0x94   :  { %s241_s4 = scalar_lea.hbm %s355_s2, 256 }
  0x95   :  { %p242_p5 = scmp.ne.s32.totalorder %s355_s2, %s241_s4  ;;  %p245_p6 = scmp.lt.u32.totalorder %s241_s4, %s355_s2 }
  0x97   :  { %p247_p7 = pnand %p245_p6, %p242_p5 }
  0x99   :  { %250 = shalt.err (!%p247_p7)
}
  0x9a   :  { %s282_s9 = smov 128   ;;  %s283_s10 = smov 8   ;;  %vm141_vm11 = vcmask 261120  }
  0x9b   :  { %155 = dma.vmem_to_hbm [thread:$0]  %s150_s27, 256, %s355_s2, [#allocation3], %s282_s9, %s282_s9, %s283_s10  }
  0x9c   :  { %s284_s13 = smov [#allocation4]  }
  0x9d   :  { %s161_s14 = sshll.u32 %s284_s13, 4  ;;  %s162_s14 = int_to_ptr.vmem [resolvable:$true] %s161_s14 }
  0x9e   :  { %s251_s15 = scalar_lea.vmem %s162_s14, 256  ;;  %p256_p9 = scmp.lt.s32.totalorder %s162_s14, %s162_s14 }
  0x9f   :  { %p252_p8 = scmp.ne.s32.totalorder %s162_s14, %s251_s15  ;;  %p257_p10 = scmp.lt.s32.totalorder %s251_s15, %s251_s15 }
  0xa1   :  { %p258_p11 = por %p257_p10, %p256_p9 }
  0xa3   :  { %p259_p12 = pnand %p258_p11, %p252_p8 }
 0x165   :  { %v202_v25 = vpop.f32.mrb[0].mxu0 }
 0x166   :  { %143 = vst.msk [vmem:[#allocation4 + $0x8] sm:$0xff] %vm141_vm11, %v202_v25  ;;  %v132_v26 = vpop.f32.mrb[1].mxu0 }
 0x167   :  { %142 = vst.msk [vmem:[#allocation4] sm:$0xff] %vm141_vm11, %v132_v26 }
 0x168   :  { %262 = shalt.err (!%p259_p12)
}
 0x169   :  { %s263_s18 = scalar_lea.hbm %s356_s3, 256 }
 0x16a   :  { %p264_p13 = scmp.ne.s32.totalorder %s356_s3, %s263_s18  ;;  %p267_p0 = scmp.lt.u32.totalorder %s263_s18, %s356_s3 }
 0x16c   :  { %p269_p1 = pnand %p267_p0, %p264_p13 }
 0x16e   :  { %272 = shalt.err (!%p269_p1)
}
 0x16f   :  { %167 = dma.vmem_to_hbm [thread:$0]  %s162_s14, 256, %s356_s3, [#allocation5], %s282_s9, %s282_s9, %s283_s10  }
 0x170   :  { %273 = dma.done.wait [#allocation3], 256  }
 0x171   :  { %274 = vsyncadd [#allocation3], 4294967040 }
 0x172   :  { %275 = dma.done.wait [#allocation5], 256  }
 0x173   :  { %276 = vsyncadd [#allocation5], 4294967040 }
 0x174   :  { %174 = vsyncpa [#allocation3], 1 }
 0x175   :  { %175 = vsyncpa [#allocation5], 1 }

</bundles_post_ra>
